<compile_context>
chip_gen: v5e
topology: v5e:2x2
jax: 0.10.0
libtpu: 0.0.40
codegen_flags: <defaults>
</compile_context>

<pallas_src>
import functools

import jax
import jax.numpy as jnp
import numpy as np
from jax.experimental import pallas as pl
from jax.experimental.pallas import tpu as pltpu


# ---------------------------------------------------------------------------
# Stage 1: channel-wise max / mean over a lane-dense (B, C, H*W) stream.
# ---------------------------------------------------------------------------
def _channel_stats_kernel(x_ref, o_ref, mx_ref, sm_ref, *, n_channels, ragged_c):
    # x_ref : VMEM (1, c_tile, sp_block)   current channel tile (native dtype)
    # o_ref : VMEM (1, 2, sp_block) f32    row 0 = channel max, row 1 = channel mean
    # mx_ref, sm_ref : VMEM (1, sp_block) f32 running max / running sum
    ci = pl.program_id(2)

    @pl.when(ci == 0)
    def _init():
        mx_ref[...] = jnp.full(mx_ref.shape, -jnp.inf, dtype=mx_ref.dtype)
        sm_ref[...] = jnp.zeros(sm_ref.shape, dtype=sm_ref.dtype)

    xb = x_ref[0]                                     # (c_tile, sp_block), native dtype
    if ragged_c:
        c_tile = xb.shape[0]
        cidx = jax.lax.broadcasted_iota(jnp.int32, (c_tile, 1), 0) + ci * c_tile
        valid = cidx < n_channels                     # mask the ragged last channel tile
        x_max = jnp.where(valid, xb, -jnp.inf)
        x_sum = jnp.where(valid, xb, 0.0)
    else:
        x_max = xb
        x_sum = xb

    mx_ref[...] = jnp.maximum(
        mx_ref[...], jnp.max(x_max, axis=0, keepdims=True).astype(jnp.float32))
    sm_ref[...] = sm_ref[...] + jnp.sum(
        x_sum, axis=0, dtype=jnp.float32, keepdims=True)

    @pl.when(ci == pl.num_programs(2) - 1)
    def _finalize():
        o_ref[0, 0, :] = mx_ref[0, :].astype(o_ref.dtype)
        o_ref[0, 1, :] = (sm_ref[0, :] * (1.0 / float(n_channels))).astype(o_ref.dtype)


# ---------------------------------------------------------------------------
# Stage 2: tiny 2 -> 1 KxK conv + sigmoid over the zero-padded max/avg maps.
# ---------------------------------------------------------------------------
def _conv_sigmoid_kernel(w_ref, p_ref, o_ref, *, height, width, ksize):
    # w_ref : SMEM (2*K*K,) f32 taps  [in=0 (max map) row-major, in=1 (avg map) row-major]
    # p_ref : VMEM (1, 2, H+2p, W+2p) f32 zero-padded max/avg maps
    # o_ref : VMEM (1, 1, H, W)       sigmoid(conv) output (x dtype)
    acc = jnp.zeros((height, width), jnp.float32)
    kk = ksize * ksize
    for c in range(2):                                # fully unrolled at trace time
        for dh in range(ksize):
            for dw in range(ksize):
                tap = w_ref[c * kk + dh * ksize + dw]
                acc = acc + tap * p_ref[0, c, pl.ds(dh, height), pl.ds(dw, width)]
    o_ref[0, 0] = jax.nn.sigmoid(acc).astype(o_ref.dtype)


def spatial_attention(x, conv_weight, *, block_budget_bytes=4 * 1024 * 1024):
    """CBAM spatial attention.

    x:           (B, C, H, W)
    conv_weight: (1, 2, K, K) PyTorch OIHW layout (in-channel 0 = max map, 1 = avg map)
    Returns sigmoid(conv([max_c(x); mean_c(x)])) of shape (B, 1, H, W).
    """
    B, C, H, W = x.shape
    out_ch, in_ch, K, K2 = conv_weight.shape
    if out_ch != 1 or in_ch != 2 or K != K2 or K not in (3, 7):
        raise ValueError("conv_weight must have shape (1, 2, k, k) with k in (3, 7)")
    pad = K // 2
    HW = H * W
    itemsize = jnp.dtype(x.dtype).itemsize

    def _lane(n):   # lane (last-dim) padding to 128
        return -(-n // 128) * 128

    def _sub(n):    # sublane (2nd-to-last-dim) padding to 8
        return -(-n // 8) * 8

    # ---- spatial (lane) blocking -------------------------------------------
    sp_block, n_sp = HW, 1
    min_row_bytes = _sub(min(8, C)) * _lane(HW) * itemsize
    need_split_budget = min_row_bytes > block_budget_bytes
    want_split_megacore = (B == 1 and HW >= 256)      # feed the 2nd v7x TensorCore
    if (need_split_budget or want_split_megacore) and HW > 128:
        if need_split_budget:
            tgt = (block_budget_bytes // (_sub(min(8, C)) * itemsize)) // 128 * 128
        else:
            tgt = (_lane(HW) // 2) // 128 * 128
        sp_block = max(128, min(tgt, _lane(HW)))
        n_sp = pl.cdiv(HW, sp_block)
        if n_sp == 1:
            sp_block = HW

    # ---- channel (sublane) tiling: multiple of 8 or full C, padding-aware ---
    row_bytes = _lane(sp_block) * itemsize
    max_ct = max(1, block_budget_bytes // row_bytes)
    if C <= 8 or max_ct >= C:
        c_tile = C
    else:
        c_tile = max(8, (max_ct // 8) * 8)
    n_ct = pl.cdiv(C, c_tile)
    ragged_c = (C % c_tile) != 0

    # ---- VMEM accounting (double-buffered blocks + resident scratch) --------
    x_block_bytes = _sub(c_tile) * _lane(sp_block) * itemsize
    out_block_bytes = _sub(2) * _lane(sp_block) * 4
    scratch_bytes = 2 * 8 * _lane(sp_block) * 4
    vmem_needed = 2 * x_block_bytes + 2 * out_block_bytes + scratch_bytes
    vmem_limit = int(min(100 << 20, max(32 << 20, vmem_needed + (4 << 20))))

    x_flat = x.reshape(B, C, HW)        # free metadata reshape for contiguous NCHW

    stats_cost = pl.CostEstimate(
        flops=int(2 * B * C * HW),
        transcendentals=0,
        bytes_accessed=int(B * C * HW * itemsize + B * 2 * HW * 4),
    )

    maps_flat = pl.pallas_call(
        functools.partial(_channel_stats_kernel, n_channels=C, ragged_c=ragged_c),
        out_shape=jax.ShapeDtypeStruct((B, 2, HW), jnp.float32),
        grid_spec=pltpu.PrefetchScalarGridSpec(
            num_scalar_prefetch=0,
            grid=(B, n_sp, n_ct),
            in_specs=[
                pl.BlockSpec((1, c_tile, sp_block), lambda b, s, ci: (b, ci, s)),
            ],
            out_specs=pl.BlockSpec((1, 2, sp_block), lambda b, s, ci: (b, 0, s)),
            scratch_shapes=[
                pltpu.VMEM((1, sp_block), jnp.float32),   # running channel max
                pltpu.VMEM((1, sp_block), jnp.float32),   # running channel sum (f32)
            ],
        ),
        compiler_params=pltpu.CompilerParams(
            dimension_semantics=("parallel", "parallel", "arbitrary"),
            vmem_limit_bytes=vmem_limit,
        ),
        cost_estimate=stats_cost,
    )(x_flat)

    # ---- stage 2: 2 -> 1 KxK conv + sigmoid on the tiny (B, 2, H, W) maps ---
    maps = maps_flat.reshape(B, 2, H, W)
    padded = jnp.pad(maps, ((0, 0), (0, 0), (pad, pad), (pad, pad)))
    w_flat = conv_weight.astype(jnp.float32).reshape(-1)            # (2*K*K,)

    conv_cost = pl.CostEstimate(
        flops=int(4 * B * K * K * HW),
        transcendentals=int(B * HW),
        bytes_accessed=int(B * 2 * (H + 2 * pad) * (W + 2 * pad) * 4
                           + B * HW * itemsize + 2 * K * K * 4),
    )

    out = pl.pallas_call(
        functools.partial(_conv_sigmoid_kernel, height=H, width=W, ksize=K),
        out_shape=jax.ShapeDtypeStruct((B, 1, H, W), x.dtype),
        grid_spec=pltpu.PrefetchScalarGridSpec(
            num_scalar_prefetch=0,
            grid=(B,),
            in_specs=[
                pl.BlockSpec(memory_space=pltpu.MemorySpace.SMEM),               # taps
                pl.BlockSpec((1, 2, H + 2 * pad, W + 2 * pad),
                             lambda b: (b, 0, 0, 0)),
            ],
            out_specs=pl.BlockSpec((1, 1, H, W), lambda b: (b, 0, 0, 0)),
        ),
        compiler_params=pltpu.CompilerParams(
            dimension_semantics=("parallel",),
            vmem_limit_bytes=32 * 1024 * 1024,
        ),
        cost_estimate=conv_cost,
    )(w_flat, padded)
    return out


def _reference(x, conv_weight):
    # Plain-JAX reference matching the PyTorch module.
    mx = jnp.max(x, axis=1, keepdims=True)
    av = jnp.mean(x, axis=1, keepdims=True)
    stacked = jnp.concatenate([mx, av], axis=1)                     # (B, 2, H, W)
    p = conv_weight.shape[-1] // 2
    out = jax.lax.conv_general_dilated(
        stacked, conv_weight, window_strides=(1, 1),
        padding=((p, p), (p, p)),
        dimension_numbers=("NCHW", "OIHW", "NCHW"))
    return jax.nn.sigmoid(out)


if __name__ == "__main__":
    key = jax.random.PRNGKey(0)
    kx, kw, kx2, kx3 = jax.random.split(key, 4)

    # Case 1: default path (single channel step, full spatial extent).
    B, C, H, W = 2, 32, 16, 16
    K = 7
    x = jax.random.normal(kx, (B, C, H, W), dtype=jnp.float32)
    # Conv2d(2, 1, 7, padding=3, bias=False) weight -> (1, 2, 7, 7)
    w = jax.random.normal(kw, (1, 2, K, K), dtype=jnp.float32) * (1.0 / np.sqrt(2 * K * K))

    out = spatial_attention(x, w)
    jax.block_until_ready(out)
    assert out.shape == (B, 1, H, W)
    np.testing.assert_allclose(np.asarray(out), np.asarray(_reference(x, w)),
                               rtol=1e-5, atol=1e-5)

    # Case 2: ragged channel tiling (C=20 with c_tile=8 -> 3 steps, masked last tile).
    x2 = jax.random.normal(kx2, (2, 20, 16, 16), dtype=jnp.float32)
    out2 = spatial_attention(x2, w, block_budget_bytes=8 * 256 * 4)
    jax.block_until_ready(out2)
    np.testing.assert_allclose(np.asarray(out2), np.asarray(_reference(x2, w)),
                               rtol=1e-5, atol=1e-5)

    # Case 3: batch=1 -> spatial axis split into 2 parallel blocks (megacore), k=3.
    K3 = 3
    w3 = jax.random.normal(kw, (1, 2, K3, K3), dtype=jnp.float32) * (1.0 / np.sqrt(2 * K3 * K3))
    x3 = jax.random.normal(kx3, (1, 16, 16, 32), dtype=jnp.float32)
    out3 = spatial_attention(x3, w3)
    jax.block_until_ready(out3)
    np.testing.assert_allclose(np.asarray(out3), np.asarray(_reference(x3, w3)),
                               rtol=1e-5, atol=1e-5)

    print("KERNEL_OK")
</pallas_src>

<mosaic_0001>
module attributes {stable_mosaic.version = 11 : i64} {
  func.func @_channel_stats_kernel(%arg0: i32, %arg1: i32, %arg2: i32, %arg3: memref<1x32x256xf32, #tpu.memory_space<vmem>>, %arg4: memref<1x2x256xf32, #tpu.memory_space<vmem>>, %arg5: memref<1x256xf32, #tpu.memory_space<vmem>>, %arg6: memref<1x256xf32, #tpu.memory_space<vmem>>) attributes {dimension_semantics = [#tpu.dimension_semantics<parallel>, #tpu.dimension_semantics<parallel>, #tpu.dimension_semantics<arbitrary>], iteration_bounds = array<i64: 2, 1, 1>, scalar_prefetch = 0 : i64, scratch_operands = 2 : i64, tpu.core_type = #tpu.core_type<tc>, window_params = [{transform_indices = @transform_0, window_bounds = array<i64: 1, 32, 256>}, {transform_indices = @transform_1, window_bounds = array<i64: 1, 2, 256>}]} {
    %c0_i32 = arith.constant 0 : i32
    %0 = arith.cmpi eq, %arg2, %c0_i32 : i32
    %1 = arith.extui %0 : i1 to i32
    %c0_i32_0 = arith.constant 0 : i32
    %2 = arith.cmpi ne, %1, %c0_i32_0 : i32
    scf.if %2 {
      %cst_14 = arith.constant 0xFF800000 : f32
      %18 = vector.broadcast %cst_14 : f32 to vector<1x256xf32>
      %c0_15 = arith.constant 0 : index
      %c0_16 = arith.constant 0 : index
      %19 = vector.load %arg5[%c0_15, %c0_16] : memref<1x256xf32, #tpu.memory_space<vmem>>, vector<1x256xf32>
      tpu.vector_store %arg5[%c0_15, %c0_16], %18 {strides = array<i32>} : memref<1x256xf32, #tpu.memory_space<vmem>>, vector<1x256xf32>,
      %cst_17 = arith.constant 0.000000e+00 : f32
      %20 = vector.broadcast %cst_17 : f32 to vector<1x256xf32>
      %c0_18 = arith.constant 0 : index
      %c0_19 = arith.constant 0 : index
      %21 = vector.load %arg6[%c0_18, %c0_19] : memref<1x256xf32, #tpu.memory_space<vmem>>, vector<1x256xf32>
      tpu.vector_store %arg6[%c0_18, %c0_19], %20 {strides = array<i32>} : memref<1x256xf32, #tpu.memory_space<vmem>>, vector<1x256xf32>,
    } else {
    }
    %c0 = arith.constant 0 : index
    %c0_1 = arith.constant 0 : index
    %c0_2 = arith.constant 0 : index
    %3 = vector.load %arg3[%c0, %c0_1, %c0_2] : memref<1x32x256xf32, #tpu.memory_space<vmem>>, vector<1x32x256xf32>
    %4 = vector.shape_cast %3 : vector<1x32x256xf32> to vector<32x256xf32>
    %c0_3 = arith.constant 0 : index
    %c0_4 = arith.constant 0 : index
    %5 = vector.load %arg5[%c0_3, %c0_4] : memref<1x256xf32, #tpu.memory_space<vmem>>, vector<1x256xf32>
    %cst = arith.constant dense<0xFF800000> : vector<256xf32>
    %6 = vector.multi_reduction <maximumf>, %4, %cst [0] : vector<32x256xf32> to vector<256xf32>
    %7 = vector.shape_cast %6 : vector<256xf32> to vector<1x256xf32>
    %8 = arith.maximumf %5, %7 : vector<1x256xf32>
    %c0_5 = arith.constant 0 : index
    %c0_6 = arith.constant 0 : index
    %9 = vector.load %arg5[%c0_5, %c0_6] : memref<1x256xf32, #tpu.memory_space<vmem>>, vector<1x256xf32>
    tpu.vector_store %arg5[%c0_5, %c0_6], %8 {strides = array<i32>} : memref<1x256xf32, #tpu.memory_space<vmem>>, vector<1x256xf32>,
    %c0_7 = arith.constant 0 : index
    %c0_8 = arith.constant 0 : index
    %10 = vector.load %arg6[%c0_7, %c0_8] : memref<1x256xf32, #tpu.memory_space<vmem>>, vector<1x256xf32>
    %cst_9 = arith.constant dense<0.000000e+00> : vector<256xf32>
    %11 = vector.multi_reduction <add>, %4, %cst_9 [0] : vector<32x256xf32> to vector<256xf32>
    %12 = vector.shape_cast %11 : vector<256xf32> to vector<1x256xf32>
    %13 = arith.addf %10, %12 : vector<1x256xf32>
    %c0_10 = arith.constant 0 : index
    %c0_11 = arith.constant 0 : index
    %14 = vector.load %arg6[%c0_10, %c0_11] : memref<1x256xf32, #tpu.memory_space<vmem>>, vector<1x256xf32>
    tpu.vector_store %arg6[%c0_10, %c0_11], %13 {strides = array<i32>} : memref<1x256xf32, #tpu.memory_space<vmem>>, vector<1x256xf32>,
    %c0_i32_12 = arith.constant 0 : i32
    %15 = arith.cmpi eq, %arg2, %c0_i32_12 : i32
    %16 = arith.extui %15 : i1 to i32
    %c0_i32_13 = arith.constant 0 : i32
    %17 = arith.cmpi ne, %16, %c0_i32_13 : i32
    scf.if %17 {
      %c0_14 = arith.constant 0 : index
      %c0_15 = arith.constant 0 : index
      %18 = vector.load %arg5[%c0_14, %c0_15] : memref<1x256xf32, #tpu.memory_space<vmem>>, vector<1x256xf32>
      %19 = vector.shape_cast %18 : vector<1x256xf32> to vector<256xf32>
      %c0_16 = arith.constant 0 : index
      %c0_17 = arith.constant 0 : index
      %c0_18 = arith.constant 0 : index
      %20 = vector.load %arg4[%c0_16, %c0_17, %c0_18] : memref<1x2x256xf32, #tpu.memory_space<vmem>>, vector<1x1x256xf32>
      %21 = vector.shape_cast %20 : vector<1x1x256xf32> to vector<256xf32>
      %22 = vector.shape_cast %19 : vector<256xf32> to vector<1x1x256xf32>
      tpu.vector_store %arg4[%c0_16, %c0_17, %c0_18], %22 {strides = array<i32>} : memref<1x2x256xf32, #tpu.memory_space<vmem>>, vector<1x1x256xf32>,
      %c0_19 = arith.constant 0 : index
      %c0_20 = arith.constant 0 : index
      %23 = vector.load %arg6[%c0_19, %c0_20] : memref<1x256xf32, #tpu.memory_space<vmem>>, vector<1x256xf32>
      %24 = vector.shape_cast %23 : vector<1x256xf32> to vector<256xf32>
      %cst_21 = arith.constant 3.125000e-02 : f32
      %25 = vector.broadcast %cst_21 : f32 to vector<256xf32>
      %26 = arith.mulf %24, %25 : vector<256xf32>
      %c0_22 = arith.constant 0 : index
      %c1 = arith.constant 1 : index
      %c0_23 = arith.constant 0 : index
      %27 = vector.load %arg4[%c0_22, %c1, %c0_23] : memref<1x2x256xf32, #tpu.memory_space<vmem>>, vector<1x1x256xf32>
      %28 = vector.shape_cast %27 : vector<1x1x256xf32> to vector<256xf32>
      %29 = vector.shape_cast %26 : vector<256xf32> to vector<1x1x256xf32>
      tpu.vector_store %arg4[%c0_22, %c1, %c0_23], %29 {strides = array<i32>} : memref<1x2x256xf32, #tpu.memory_space<vmem>>, vector<1x1x256xf32>,
    } else {
    }
    return
  }
  func.func @transform_0(%arg0: i32, %arg1: i32, %arg2: i32) -> (i32, i32, i32) {
    %c0_i32 = arith.constant 0 : i32
    return %arg0, %arg2, %arg1 : i32, i32, i32
  }
  func.func @transform_1(%arg0: i32, %arg1: i32, %arg2: i32) -> (i32, i32, i32) {
    %c0_i32 = arith.constant 0 : i32
    %c0_i32_0 = arith.constant 0 : i32
    return %arg0, %c0_i32, %arg1 : i32, i32, i32
  }
}

</mosaic_0001>

<bundles_post_ra>
// kernel: tpu_custom_call.1
= control target key start
LH: loop header
LB: loop body
LE: loop exit
PB: predicated region body
PF: predicated region fallthrough
CT: control target
= control target key end

     0   :  { %6 = vsyncpa [#allocation5], 0  ;;  %s711_s0 = inlined_call_operand.hbm [shape: f32[2,32,256], index: 0, kind: input, shape index: {}]   ;;  %s712_s1 = inlined_call_operand.hbm [shape: f32[2,2,256], index: 1, kind: output, shape index: {}]  }
   0x1   :  { %8 = vsyncpa [#allocation5 + $0x1], 0 }
   0x2   :  { %9 = vsyncpa [#allocation6], 0 }
   0x3   :  { %11 = vsyncpa [#allocation6 + $0x1], 0  ;;  %s574_s6 = smov 0   ;;  %s576_s7 = smov 0  }
   0x4   :  { %s578_s8 = smov 0   ;;  %s580_s9 = smov 0  }
   0x5   :  { %s582_s10 = smov 0   ;;  %s584_s11 = smov 0  }
   0x6 LB: > { %s362_s12 = sadd.s32 4294967295, %s558_s11   ;;  %s363_s13 = sadd.s32 4294967294, %s558_s11   ;;  %s558_s11 = sphi %s584_s11, %s17_s11   ;;  %s554_s10 = sphi %s582_s10, %s723_s10   ;;  %s550_s9 = sphi %s580_s9, %s722_s9   ;;  %s546_s8 = sphi %s578_s8, %s721_s8   ;;  %s542_s7 = sphi %s576_s7, %s720_s7   ;;  %s538_s6 = sphi %s574_s6, %s719_s6  }
   0x7   : > { %s36_s14 = sadd.s32 1, %s554_s10  ;;  %s47_s15 = sadd.s32 1, %s546_s8 }
   0x8   : > { %p38_p0 = scmp.ge.s32.totalorder %s36_s14, 2  ;;  %p54_p1 = scmp.ne.s32.totalorder %s546_s8, %s542_s7 }
   0x9   : > { %p55_p2 = scmp.eq.s32.totalorder %s558_s11, 0  ;;  %p60_p3 = scmp.ne.s32.totalorder %s542_s7, %s538_s6 }
   0xa   : > { %s725_s14 = smov (%p38_p0, %s36_s14), 0  ;;  %p61_p5 = scmp.eq.s32.totalorder %s362_s12, 0 }
   0xb   : > { %p615_p4 = por %p55_p2, %p54_p1  ;;  %s40_s17 = ssub.s32 %s554_s10, %s725_s14 }
   0xc   : > { %p86_p6 = scmp.eq.s32.totalorder %s362_s12, 1  ;;  %p45_p7 = scmp.eq.s32.totalorder %s40_s17, 0 }
   0xd   : > { %p621_p8 = por %p61_p5, %p60_p3  ;;  %p92_p10 = scmp.eq.s32.totalorder %s363_s13, 1 }
   0xe   : > { %p625_p9 = por %p86_p6, %p54_p1  ;;  %p365_p12 = scmp.ge.s32.totalorder %s558_s11, 2 }
   0xf   : > { %s630_s20 = scalar_select %p45_p7, %s546_s8, %s47_s15  }
  0x10   : > { %p632_p11 = por %p92_p10, %p60_p3  ;;  %p392_p13 = scmp.lt.s32.totalorder %s558_s11, 2 }
  0x11   : > { %s112_s22 = sand.u32 1, %s546_s8   ;;  %s378_s24 = sshll.u32 %s554_s10, 6 }
  0x12   : > { %s366_s23 = sshll.u32 %s112_s22, 6  ;;  %s126_s27 = scalar_lea.hbm %s711_s0, %s378_s24 }
  0x13   : > { %s116_s28 = scalar_lea.vmem [#allocation4], %s366_s23  ;;  %s127_s30 = sshll.u32 %s126_s27, 4  ;;  %s128_s30 = int_to_ptr.hbm [resolvable:$true] %s127_s30 }
  0x14   : > { %s129_s29 = sshll.u32 %s116_s28, 4  ;;  %p385_p0 = pnand %p392_p13, %p615_p4  ;;  %s130_s29 = int_to_ptr.vmem [resolvable:$true] %s129_s29 }
  0x15   : > { %p369_p1 = scmp.ge.s32.totalorder %s558_s11, 1  ;;  %s113_s2 = scalar_lea.sflag [#allocation5], %s112_s22 }
  0x16   : > { %s560_s3 = smov 256   ;;  %s561_s4 = smov 16  }
  0x17   : > { %387 = dma.hbm_to_vmem [thread:$0]  (!%p385_p0), %s128_s30, 1024, %s130_s29, %s113_s2, %s560_s3, %s560_s3, %s561_s4  }
  0x18   : > { %p137_p2 = scmp.lt.s32.totalorder %s558_s11, 3 }
  0x1a   : > { %p138_p3 = pnand %p369_p1, %p137_p2 }
  0x1b   : > { %s648_s5 = sand.u32 (!%p138_p3), 1, %s542_s7  }
  0x1c   : > { %141 = sbr.rel (%p138_p3) target bundleno = 72 (0x48), region = 24  ;;  %s370_s12 = sshll.u32 (!%p138_p3), %s648_s5, 6 }
  0x1d   : > { %s144_s13 = scalar_lea.sflag (!%p138_p3), [#allocation5], %s648_s5  ;;  %s147_s15 = scalar_lea.vmem (!%p138_p3), [#allocation4], %s370_s12 }
  0x21   : > { %529 = dma.done.wait (%p621_p8), %s144_s13, 1024  }
  0x22   : > { %531 = vsyncadd (%p621_p8), %s144_s13, 4294966272  ;;  %v174_v0 = vlaneseq  ;;  %v562_v2 = vmov 0.0   ;;  %v563_v3 = vmov -inf   ;;  %v180_v4 = vld [vmem:[%s147_s15] sm:$0xff]  ;;  %v181_v5 = vld [vmem:[%s147_s15 + $0x8] sm:$0xff]  ;;  %vm210_vm1 = vcmask 1040384  }
  0x23   : > { %v182_v6 = vld [vmem:[%s147_s15 + $0x10] sm:$0xff]  ;;  %v183_v7 = vld [vmem:[%s147_s15 + $0x18] sm:$0xff]  ;;  %v184_v8 = vld [vmem:[%s147_s15 + $0x20] sm:$0xff]  ;;  %s371_s16 = sshll.u32 %s648_s5, 2  ;;  %s379_s17 = sshll.u32 %s550_s9, 2 }
  0x24   : > { %vm656_vm0 = vcmp.lt.s32.totalorder %v174_v0, 256  ;;  %v185_v9 = vld [vmem:[%s147_s15 + $0x28] sm:$0xff]  ;;  %v220_v10 = vadd.f32 %v182_v6, %v180_v4  ;;  %v186_v11 = vld [vmem:[%s147_s15 + $0x30] sm:$0xff]  ;;  %v187_v12 = vld [vmem:[%s147_s15 + $0x38] sm:$0xff]  ;;  %v229_v13 = vadd.f32 %v183_v7, %v181_v5  ;;  %v189_v14 = vmax.f32 %v180_v4, %v184_v8  ;;  %s268_s23 = scalar_lea.hbm %s712_s1, %s379_s17  ;;  %s166_s24 = scalar_lea.vmem [#allocation7], %s371_s16 }
  0x25   : > { %179 = vst.msk [vmem:[#allocation3] sm:$0x3] %vm656_vm0, %v562_v2  ;;  %v198_v15 = vmax.f32 %v181_v5, %v185_v9  ;;  %v190_v17 = vmax.f32 %v182_v6, %v186_v11  ;;  %v199_v18 = vmax.f32 %v183_v7, %v187_v12  ;;  %s270_s25 = sshll.u32 %s166_s24, 4  ;;  %s272_s26 = sshll.u32 %s268_s23, 4  ;;  %s271_s25 = int_to_ptr.vmem [resolvable:$true] %s270_s25  ;;  %s273_s26 = int_to_ptr.hbm [resolvable:$true] %s272_s26 }
  0x26   : > { %178 = vst.msk [vmem:[#allocation2] sm:$0x3] %vm656_vm0, %v563_v3  ;;  %v221_v16 = vadd.f32 %v220_v10, %v184_v8  ;;  %v230_v19 = vadd.f32 %v229_v13, %v185_v9  ;;  %s255_s9 = scalar_lea.sflag [#allocation6], %s648_s5  ;;  %s490_s27 = sshra.s32 %s273_s26, 4  ;;  %s491_s27 = int_to_ptr.hbm [resolvable:$true] %s490_s27 }
  0x27   : > { %v191_v21 = vmax.f32 %v189_v14, %v190_v17  ;;  %v200_v22 = vmax.f32 %v198_v15, %v199_v18  ;;  %s492_s28 = scalar_lea.hbm %s491_s27, 4  ;;  %s496_s2 = scalar_lea.hbm %s712_s1, 8 }
  0x28   : > { %v222_v20 = vadd.f32 %v221_v16, %v186_v11  ;;  %v231_v23 = vadd.f32 %v230_v19, %v187_v12  ;;  %p493_p4 = scmp.ne.s32.totalorder %s491_s27, %s492_s28  ;;  %p497_p7 = scmp.lt.s32.totalorder %s491_s27, %s712_s1 }
  0x29   : > { %v192_v25 = vrot.slane %v191_v21, 4  ;;  %v201_v26 = vrot.slane %v200_v22, 4  ;;  %p498_p8 = scmp.lt.s32.totalorder %s496_s2, %s492_s28 }
  0x2a   : > { %v223_v24 = vrot.slane %v222_v20, 4  ;;  %v232_v27 = vrot.slane %v231_v23, 4  ;;  %p494_p5 = pnand %p493_p4, %p625_p9 }
  0x2b   : > { %v193_v29 = vmax.f32 %v191_v21, %v192_v25  ;;  %v202_v30 = vmax.f32 %v200_v22, %v201_v26  ;;  %p499_p10 = por %p498_p8, %p497_p7 }
  0x2c   : > { %v224_v28 = vadd.f32 %v223_v24, %v222_v20  ;;  %v233_v31 = vadd.f32 %v232_v27, %v231_v23  ;;  %v219_v50 = vld [vmem:[#allocation3] sm:$0x3]  ;;  %p495_p6 = pneg %p494_p5 }
  0x2d   : > { %v194_v33 = vrot.slane %v193_v29, 2  ;;  %v203_v34 = vrot.slane %v202_v30, 2  ;;  %v188_v48 = vld [vmem:[#allocation2] sm:$0x3] }
  0x2e   : > { %v225_v32 = vrot.slane %v224_v28, 2  ;;  %v234_v35 = vrot.slane %v233_v31, 2  ;;  %p500_p13 = pnand %p499_p10, %p495_p6 }
  0x2f   : > { %v195_v37 = vmax.f32 %v193_v29, %v194_v33  ;;  %v204_v38 = vmax.f32 %v202_v30, %v203_v34 }
  0x30   : > { %v226_v36 = vadd.f32 %v225_v32, %v224_v28  ;;  %v235_v39 = vadd.f32 %v234_v35, %v233_v31 }
  0x31   : > { %v196_v41 = vrot.slane %v195_v37, 1  ;;  %v205_v42 = vrot.slane %v204_v38, 1 }
  0x32   : > { %v227_v40 = vrot.slane %v226_v36, 1  ;;  %v236_v43 = vrot.slane %v235_v39, 1 }
  0x33   : > { %v197_v44 = vmax.f32 %v195_v37, %v196_v41  ;;  %v206_v45 = vmax.f32 %v204_v38, %v205_v42 }
  0x34   : > { %v228_v46 = vadd.f32 %v227_v40, %v226_v36  ;;  %v237_v47 = vadd.f32 %v236_v43, %v235_v39 }
  0x35   : > { %v209_v49 = vrot.slane %v206_v45, 7 }
  0x36   : > { %v240_v51 = vrot.slane %v237_v47, 7 }
  0x37   : > { %v211_v52 = vsel %vm210_vm1, %v197_v44, %v209_v49 }
  0x38   : > { %v241_v53 = vsel %vm210_vm1, %v228_v46, %v240_v51  ;;  %v213_v54 = vmax.f32 %v188_v48, %v211_v52 }
  0x39   : > { %v243_v55 = vadd.f32 %v241_v53, %v219_v50 }
  0x3a   : > { %218 = vst.msk [vmem:[#allocation2] sm:$0x3] %vm656_vm0, %v213_v54 }
  0x3b   : > { %244 = vst.msk [vmem:[#allocation3] sm:$0x3] %vm656_vm0, %v243_v55 }
  0x41   : > { %v248_v56 = vld [vmem:[#allocation2] sm:$0x3] }
  0x42   : > { %249 = vst.msk [vmem:[%s166_s24] ss:$2 sm:$0x3] %vm656_vm0, %v248_v56  ;;  %v250_v57 = vld [vmem:[#allocation3] sm:$0x3] }
  0x43   : > { %v251_v58 = vmul.f32 0.03125, %v250_v57 }
  0x45   : > { %372 = vst.msk [vmem:[%s166_s24 + $0x1] ss:$2 sm:$0x3] %vm656_vm0, %v251_v58 }
  0x46   : > { %503 = shalt.err (!%p500_p13)
}
  0x47   : > { %382 = dma.vmem_to_hbm [thread:$0]  (%p625_p9), %s271_s25, 64, %s273_s26, %s255_s9  }
  0x48 PF: > { %s284_s5 = sand.u32 1, %s538_s6   ;;  %p389_p0 = pnand %p365_p12, %p632_p11 }
  0x49   : > { %s285_s12 = scalar_lea.sflag [#allocation6], %s284_s5 }
  0x4a   : > { %p390_p1 = pneg %p389_p0 }
  0x4c   : > { %533 = dma.done.wait (%p390_p1), %s285_s12, 64  }
  0x4d   : > { %535 = vsyncadd (%p390_p1), %s285_s12, 4294967232  ;;  %s17_s11 = sadd.s32 1, %s558_s11   ;;  %s719_s6 = smov %s542_s7 }
  0x4e   : > { %p14_p2 = scmp.ge.s32.totalorder %s17_s11, 4   ;;  %s720_s7 = smov %s546_s8 }
  0x4f   : > { %s721_s8 = smov %s630_s20  ;;  %s722_s9 = smov %s554_s10 }
  0x50   : > { %s723_s10 = smov %s725_s14  ;;  %16 = sbr.rel (!%p14_p2) target bundleno = 6 (0x6), region = 78 }
  0x55   :  { %291 = vsyncpa [#allocation5], 1 }
  0x56   :  { %293 = vsyncpa [#allocation5 + $0x1], 1 }
  0x57   :  { %294 = vsyncpa [#allocation6], 1 }
  0x58   :  { %296 = vsyncpa [#allocation6 + $0x1], 1 }

</bundles_post_ra>
